<compile_context>
chip_gen: v5e
topology: v5e:2x2
jax: 0.10.0
libtpu: 0.0.40
codegen_flags: <defaults>
</compile_context>

<pallas_src>
import functools
import math

import jax
import jax.numpy as jnp
from jax.experimental import pallas as pl
from jax.experimental.pallas import tpu as pltpu


_VMEM_LIMIT = 32 * 1024 * 1024          # scoped VMEM cap (safe on v5e/v6e/v7x)
_TILE_BUDGET = 12 * 1024 * 1024         # double-buffered per-step footprint cap


def _round_up(x, m):
    return (x + m - 1) // m * m


def _pick_tm(m):
    # Big tiles when M is large (feeds the MXU, amortizes per-step overhead);
    # shrink to round_up(M, 16) when M is tiny so deep layers do not push
    # 95%-padded rows through the MXU.
    for t in (256, 128):
        if m >= 2 * t and m % t == 0:
            return t
    if m >= 128:
        return 128
    return _round_up(m, 16)


def _pick_tn(npad):
    for t in (512, 384, 256, 128):
        if npad % t == 0:
            return t
    return npad


def _pick_tk(kp, tm, tn, extra_bytes=0, budget=_TILE_BUDGET):
    """Largest 128-multiple divisor of kp whose double-buffered footprint fits."""
    if kp % 128 != 0:
        return kp                      # small K (< 128): single full-width block
    nblk = kp // 128
    for mult in range(nblk, 0, -1):
        if nblk % mult:
            continue
        tk = mult * 128
        fp = (2 * tm * tk * 2 + 2 * tk * tn * 2 + 2 * tm * tn * 2
              + tm * tn * 4 + extra_bytes)
        if fp <= budget:
            return tk
    return 128


# ---------------------------------------------------------------------------
# Pallas kernels
# ---------------------------------------------------------------------------
def _make_mm_kernel(relu, affine, has_res, single_k):
    """Fused matmul kernel: y = act((x@w) [*s+b] [+res]) with fp32 epilogue."""

    def kern(*refs):
        x_ref, w_ref = refs[0], refs[1]
        idx = 2
        s_ref = b_ref = r_ref = None
        if affine:
            s_ref, b_ref = refs[idx], refs[idx + 1]
            idx += 2
        if has_res:
            r_ref = refs[idx]
            idx += 1
        o_ref = refs[idx]

        def epilogue(y):
            if affine:
                y = y * s_ref[...] + b_ref[...]
            if has_res:
                y = y + r_ref[...].astype(jnp.float32)
            if relu:
                y = jnp.maximum(y, 0.0)
            return y.astype(o_ref.dtype)

        if single_k:
            y = jnp.dot(x_ref[...], w_ref[...],
                        preferred_element_type=jnp.float32)
            o_ref[...] = epilogue(y)
        else:
            acc_ref = refs[idx + 1]

            @pl.when(pl.program_id(2) == 0)
            def _():
                acc_ref[...] = jnp.zeros_like(acc_ref)

            acc_ref[...] += jnp.dot(x_ref[...], w_ref[...],
                                    preferred_element_type=jnp.float32)

            @pl.when(pl.program_id(2) == pl.num_programs(2) - 1)
            def _():
                o_ref[...] = epilogue(acc_ref[...])

    return kern


def _ln_kernel(x_ref, g_ref, b_ref, o_ref, *, eps, relu):
    x = x_ref[...].astype(jnp.float32)
    mu = jnp.mean(x, axis=-1, keepdims=True)
    xc = x - mu
    var = jnp.mean(xc * xc, axis=-1, keepdims=True)
    y = xc * jax.lax.rsqrt(var + eps) * g_ref[...] + b_ref[...]
    if relu:
        y = jnp.maximum(y, 0.0)
    o_ref[...] = y.astype(o_ref.dtype)


def _max_kernel(x_ref, o_ref):
    o_ref[...] = jnp.max(x_ref[...], axis=0)


# ---------------------------------------------------------------------------
# Pallas wrappers
# ---------------------------------------------------------------------------
def pallas_matmul(x, w, *, n_valid=None, scale=None, bias=None, relu=False,
                  residual=None, out_dtype=jnp.bfloat16, pad_out=False):
    """y = act((x @ w) [* scale + bias] [+ residual]).

    `w` is expected pre-padded at init to (Kp, Np) bf16 with Np a multiple of
    128 (and Kp a 128-multiple when K > 128).  MXU operands are bf16, the
    accumulation and epilogue are fp32, the output is lane-dense bf16.
    """
    M, K = x.shape
    Kp, Np = w.shape
    N = Np if n_valid is None else n_valid

    TM = _pick_tm(M)
    Mp = _round_up(M, TM)
    TN = _pick_tn(Np)
    extra = 2 * TM * TN * 2 if residual is not None else 0
    TK = _pick_tk(Kp, TM, TN, extra)
    ksteps = Kp // TK

    xb = x.astype(jnp.bfloat16)
    if Kp != K:
        xb = jnp.pad(xb, ((0, 0), (0, Kp - K)))
    if Mp != M:
        xb = jnp.pad(xb, ((0, Mp - M), (0, 0)))
    wb = w.astype(jnp.bfloat16)

    affine = (scale is not None) or (bias is not None)
    has_res = residual is not None

    if ksteps == 1:
        grid = (Mp // TM, Np // TN)
        x_map = lambda i, j: (i, 0)
        w_map = lambda i, j: (0, j)
        sb_map = lambda i, j: (0, j)
        r_map = lambda i, j: (i, j)
        o_map = lambda i, j: (i, j)
        scratch = []
        dims = ("parallel", "parallel")
    else:
        grid = (Mp // TM, Np // TN, ksteps)
        x_map = lambda i, j, k: (i, k)
        w_map = lambda i, j, k: (k, j)
        sb_map = lambda i, j, k: (0, j)
        r_map = lambda i, j, k: (i, j)
        o_map = lambda i, j, k: (i, j)
        scratch = [pltpu.VMEM((TM, TN), jnp.float32)]
        dims = ("parallel", "parallel", "arbitrary")

    args = [xb, wb]
    in_specs = [pl.BlockSpec((TM, TK), x_map),
                pl.BlockSpec((TK, TN), w_map)]

    if affine:
        def prep(v, default):
            if v is None:
                v = jnp.full((N,), default, jnp.float32)
            v = v.astype(jnp.float32).reshape(-1)
            if v.shape[0] != Np:
                v = jnp.pad(v, (0, Np - v.shape[0]))
            return v.reshape(1, Np)
        args += [prep(scale, 1.0), prep(bias, 0.0)]
        in_specs += [pl.BlockSpec((1, TN), sb_map),
                     pl.BlockSpec((1, TN), sb_map)]

    if has_res:
        rb = residual.astype(jnp.bfloat16)
        rM, rN = rb.shape
        if Mp != rM or Np != rN:
            rb = jnp.pad(rb, ((0, Mp - rM), (0, Np - rN)))
        args.append(rb)
        in_specs.append(pl.BlockSpec((TM, TN), r_map))

    kern = _make_mm_kernel(relu=relu, affine=affine, has_res=has_res,
                           single_k=(ksteps == 1))
    out = pl.pallas_call(
        kern,
        out_shape=jax.ShapeDtypeStruct((Mp, Np), out_dtype),
        grid=grid,
        in_specs=in_specs,
        out_specs=pl.BlockSpec((TM, TN), o_map),
        scratch_shapes=scratch,
        compiler_params=pltpu.CompilerParams(
            dimension_semantics=dims, vmem_limit_bytes=_VMEM_LIMIT),
    )(*args)

    if pad_out:
        return out
    if Mp != M or Np != N:
        out = out[:M, :N]
    return out


def pallas_layernorm(x, gamma, beta, eps=1e-5, relu=False,
                     out_dtype=jnp.bfloat16):
    M, D = x.shape
    TM = _pick_tm(M)
    Mp = _round_up(M, TM)
    xb = x.astype(jnp.bfloat16)
    if Mp != M:
        xb = jnp.pad(xb, ((0, Mp - M), (0, 0)))
    g = gamma.reshape(1, D).astype(jnp.float32)
    b = beta.reshape(1, D).astype(jnp.float32)
    out = pl.pallas_call(
        functools.partial(_ln_kernel, eps=eps, relu=relu),
        out_shape=jax.ShapeDtypeStruct((Mp, D), out_dtype),
        grid=(Mp // TM,),
        in_specs=[pl.BlockSpec((TM, D), lambda i: (i, 0)),
                  pl.BlockSpec((1, D), lambda i: (0, 0)),
                  pl.BlockSpec((1, D), lambda i: (0, 0))],
        out_specs=pl.BlockSpec((TM, D), lambda i: (i, 0)),
        compiler_params=pltpu.CompilerParams(
            dimension_semantics=("parallel",)),
    )(xb, g, b)
    return out[:M] if Mp != M else out


def maxpool_3x3_s2_p1(x):
    """PyTorch nn.MaxPool2d(3, 2, 1) on NHWC bf16, made separable.

    Horizontal 3-max is a cheap fused jnp reduction; the vertical 3-max runs as
    a gridded Pallas kernel over 3 stacked candidates (3x traffic, not 9x).
    """
    N, H, W, C = x.shape
    OH = (H + 2 - 3) // 2 + 1
    OW = (W + 2 - 3) // 2 + 1
    xp = jnp.pad(x, ((0, 0), (1, 1), (1, 1), (0, 0)),
                 constant_values=-jnp.inf)
    hc = [xp[:, :, dj:dj + 2 * (OW - 1) + 1:2, :] for dj in range(3)]
    hm = jnp.maximum(jnp.maximum(hc[0], hc[1]), hc[2])       # (N, H+2, OW, C)
    vc = [hm[:, di:di + 2 * (OH - 1) + 1:2, :, :] for di in range(3)]
    M = N * OH * OW
    stk = jnp.stack(vc, axis=0).reshape(3, M, C)
    TM = _pick_tm(M)
    Mp = _round_up(M, TM)
    if Mp != M:
        stk = jnp.pad(stk, ((0, 0), (0, Mp - M), (0, 0)),
                      constant_values=-jnp.inf)
    out = pl.pallas_call(
        _max_kernel,
        out_shape=jax.ShapeDtypeStruct((Mp, C), x.dtype),
        grid=(Mp // TM,),
        in_specs=[pl.BlockSpec((3, TM, C), lambda i: (0, i, 0))],
        out_specs=pl.BlockSpec((TM, C), lambda i: (i, 0)),
        compiler_params=pltpu.CompilerParams(
            dimension_semantics=("parallel",)),
    )(stk)
    return out[:M].reshape(N, OH, OW, C)


# ---------------------------------------------------------------------------
# Conv (im2col glue + fused Pallas matmul)
# ---------------------------------------------------------------------------
def conv2d_bn_act(x, p, stride=1, padding=0, relu=False, residual=None,
                  scale=None, bias=None):
    # x: NHWC bf16 ; p['w']: (Kp, Np) bf16 pre-padded, rows ordered (di,dj,cin)
    N, H, W, C = x.shape
    kh, kw, cout = p['kh'], p['kw'], p['cout']
    OH = (H + 2 * padding - kh) // stride + 1
    OW = (W + 2 * padding - kw) // stride + 1
    if padding:
        x = jnp.pad(x, ((0, 0), (padding, padding), (padding, padding), (0, 0)))
    if kh == 1 and kw == 1:
        xm = x[:, ::stride, ::stride, :].reshape(N * OH * OW, C)
    else:
        # TODO(synk): im2col still materializes kh*kw shifted bf16 copies of
        # the activation in HBM; a direct-conv kernel folding the taps into the
        # reduction grid would remove this traffic.
        cols = [x[:, di:di + stride * (OH - 1) + 1:stride,
                  dj:dj + stride * (OW - 1) + 1:stride, :]
                for di in range(kh) for dj in range(kw)]
        xm = jnp.stack(cols, axis=3).reshape(N * OH * OW, kh * kw * C)
    rm = None if residual is None else residual.reshape(N * OH * OW, cout)
    y = pallas_matmul(xm, p['w'], n_valid=cout, scale=scale, bias=bias,
                      relu=relu, residual=rm)
    return y.reshape(N, OH, OW, cout)


# ---------------------------------------------------------------------------
# Deterministic parameter construction (synthetic, weights_init-style)
# ---------------------------------------------------------------------------
class KeyGen:
    def __init__(self, seed=0):
        self._key = jax.random.PRNGKey(seed)

    def __call__(self):
        self._key, k = jax.random.split(self._key)
        return k


def make_conv(kg, kh, kw, cin, cout):
    std = math.sqrt(2.0 / (kh * kw * cout))          # weights_init semantics
    k = kh * kw * cin
    kp = _round_up(k, 128) if k > 128 else k         # 128-aligned contraction
    npad = _round_up(cout, 128)                      # lane-dense output width
    w = std * jax.random.normal(kg(), (k, cout), jnp.float32)
    wp = jnp.zeros((kp, npad), jnp.float32).at[:k, :cout].set(w)
    return {'w': wp.astype(jnp.bfloat16), 'kh': kh, 'kw': kw,
            'cin': cin, 'cout': cout}


def sine_pos_embedding_2d(h, w, dim):
    # TODO(synk): SpatialPositionalEncoderSine source is not provided; a
    # standard 2D sine embedding (half channels y, half x) is used instead.
    half = dim // 2

    def enc(n, d):
        pos = jnp.arange(n, dtype=jnp.float32)
        i = jnp.arange(d, dtype=jnp.float32)
        div = jnp.power(10000.0, (2.0 * jnp.floor(i / 2.0)) / d)
        ang = pos[:, None] / div[None, :]
        return jnp.where((jnp.arange(d) % 2) == 0, jnp.sin(ang), jnp.cos(ang))

    ey = enc(h, half)
    ex = enc(w, dim - half)
    return jnp.concatenate(
        [jnp.broadcast_to(ey[:, None, :], (h, w, half)),
         jnp.broadcast_to(ex[None, :, :], (h, w, dim - half))], axis=-1)


def make_upformer(kg, in_dim, out_dim, heads=16, ksz=3, scale=2):
    dh = in_dim // heads
    nq = scale * scale
    # to_k / to_v are 1x1 convs: weights_init std = sqrt(2/out_ch), bias = 0.
    std = math.sqrt(2.0 / in_dim)
    wtk = std * jax.random.normal(kg(), (in_dim, in_dim), jnp.float32)
    wtv = std * jax.random.normal(kg(), (in_dim, in_dim), jnp.float32)
    up_query = jax.random.normal(kg(), (nq, in_dim), jnp.float32)
    # TODO(synk): MultiHeadAttention source not provided; standard MHA
    # (Wq/Wk/Wv in_dim->in_dim, Wo in_dim->project_dim, zero biases) is used.
    lstd = 1.0 / math.sqrt(in_dim)
    wq = lstd * jax.random.normal(kg(), (in_dim, in_dim), jnp.float32)
    wk = lstd * jax.random.normal(kg(), (in_dim, in_dim), jnp.float32)
    wv = lstd * jax.random.normal(kg(), (in_dim, in_dim), jnp.float32)
    wo = lstd * jax.random.normal(kg(), (in_dim, out_dim), jnp.float32)

    # --- init-time algebraic folding (fp32) ---
    # unfold only permutes tokens => unfold(to_k(x)) @ Wk == unfold(x@(Wtk@Wk));
    # the token-independent projected queries fold into a (Cin, nq*heads) logit
    # projection; the local sine pos-encoding key term becomes a constant
    # per-(tap, query, head) logit bias; Wtv@Wv fuses the v path.
    q_proj = (up_query @ wq).reshape(nq, heads, dh)
    qmat = jnp.einsum('qhd,hg->hdqg', q_proj,
                      jnp.eye(heads, dtype=jnp.float32))
    qmat = qmat.reshape(in_dim, nq * heads)
    w_logit = (wtk @ wk @ qmat) / math.sqrt(dh)          # (Cin, nq*heads)
    w_v = wtv @ wv                                       # (Cin, Cin)
    pe = sine_pos_embedding_2d(ksz, ksz, in_dim).reshape(ksz * ksz, in_dim)
    logit_bias = pe @ w_logit                            # (ksz*ksz, nq*heads)

    n_proj = in_dim + nq * heads
    npp = _round_up(n_proj, 128)
    w_proj = jnp.zeros((in_dim, npp), jnp.float32)
    w_proj = w_proj.at[:, :in_dim].set(w_v).at[:, in_dim:n_proj].set(w_logit)
    nop = _round_up(out_dim, 128)
    wo_p = jnp.zeros((in_dim, nop), jnp.float32).at[:, :out_dim].set(wo)

    return {
        'in_dim': in_dim, 'out_dim': out_dim, 'heads': heads, 'dh': dh,
        'nq': nq, 'ksz': ksz,
        'w_proj': w_proj.astype(jnp.bfloat16),       # fused [v | logit] proj
        'wo': wo_p.astype(jnp.bfloat16),
        'logit_bias': logit_bias.reshape(1, ksz * ksz, nq * heads),
        'ln_g': jnp.ones((1, out_dim), jnp.float32),
        'ln_b': jnp.zeros((1, out_dim), jnp.float32),
    }


def make_layer(kg, inplanes, planes, blocks, stride):
    layer = []
    for b in range(blocks):
        s = stride if b == 0 else 1
        down = (s != 1) or (inplanes != planes * 4)
        layer.append({
            'c1': make_conv(kg, 1, 1, inplanes, planes),
            'c2': make_conv(kg, 3, 3, planes, planes),
            'c3': make_conv(kg, 1, 1, planes, planes * 4),
            'down': make_conv(kg, 1, 1, inplanes, planes * 4) if down else None,
            'stride': s,
        })
        inplanes = planes * 4
    return layer, inplanes


def init_params(seed=0, in_channels=4):
    # layers=50 (ResNet-50 bottleneck backbone): the only depth compatible with
    # the Upformer decoder channel plan (2048 -> conv2 -> 1024, ...).
    kg = KeyGen(seed)
    P = {'conv1': make_conv(kg, 7, 7, in_channels, 64)}
    inpl = 64
    P['layer1'], inpl = make_layer(kg, inpl, 64, 3, 1)
    P['layer2'], inpl = make_layer(kg, inpl, 128, 4, 2)
    P['layer3'], inpl = make_layer(kg, inpl, 256, 6, 2)
    P['layer4'], inpl = make_layer(kg, inpl, 512, 3, 2)
    P['conv2'] = make_conv(kg, 1, 1, 2048, 1024)
    P['conv3'] = make_conv(kg, 3, 3, 64, 1)
    P['decoder'] = {
        'tr0': make_upformer(kg, 1024, 512),
        'tr1': make_upformer(kg, 1536, 512),
        'tr2': make_upformer(kg, 1024, 256),
        'tr3': make_upformer(kg, 512, 128),
        'tr4': make_upformer(kg, 128, 64),
    }
    return P


# ---------------------------------------------------------------------------
# Forward pass
# ---------------------------------------------------------------------------
def unfold3x3(x):
    # FoldingLayer(3, stride=1, padding=1): (B,H,W,C) -> (B*H*W, 9, C)
    N, H, W, C = x.shape
    xp = jnp.pad(x, ((0, 0), (1, 1), (1, 1), (0, 0)))
    cols = [xp[:, di:di + H, dj:dj + W, :]
            for di in range(3) for dj in range(3)]
    return jnp.stack(cols, axis=3).reshape(N * H * W, 9, C)


def upformer_forward(p, x, relu=False):
    B, H, W, Cin = x.shape
    Cout, heads, dh, nq = p['out_dim'], p['heads'], p['dh'], p['nq']
    nqh = nq * heads
    T = B * H * W
    xf = x.reshape(T, Cin)

    # single fused projection: [v-map | per-(query,head) attention logits]
    proj = pallas_matmul(xf, p['w_proj'], n_valid=Cin + nqh)     # (T, Cin+nqh)
    v_map = proj[:, :Cin].reshape(B, H, W, Cin)
    lg_map = proj[:, Cin:].reshape(B, H, W, nqh)

    v_unf = unfold3x3(v_map)                                     # (T, 9, Cin)
    logits = unfold3x3(lg_map).astype(jnp.float32) + p['logit_bias']

    # softmax over the 9 taps, per (query, head) column (lane-dense)
    logits = logits - jnp.max(logits, axis=1, keepdims=True)
    attn = jnp.exp(logits)
    attn = attn / jnp.sum(attn, axis=1, keepdims=True)           # (T, 9, nqh)

    # ctx[t,q,c] = sum_tap attn[t,tap,q,head(c)] * v[t,tap,c]   (head-chunk lanes)
    attn_l = jnp.broadcast_to(
        attn.reshape(T, 9, nq, heads, 1),
        (T, 9, nq, heads, dh)).reshape(T, 9, nq, Cin)
    ctx = jnp.sum(attn_l * v_unf[:, :, None, :].astype(jnp.float32), axis=1)
    ctx = ctx.reshape(T * nq, Cin).astype(jnp.bfloat16)

    # output projection; keep the row-padded slab through the LayerNorm chain
    out = pallas_matmul(ctx, p['wo'], n_valid=Cout, pad_out=True)
    if out.shape[1] != Cout:
        out = out[:, :Cout]
    out = pallas_layernorm(out, p['ln_g'], p['ln_b'], relu=relu)
    out = out[:T * nq]

    up = out.reshape(B, H, W, 2, 2, Cout)
    return up.transpose(0, 1, 3, 2, 4, 5).reshape(B, 2 * H, 2 * W, Cout)


def bottleneck_forward(p, x):
    s = p['stride']
    if p['down'] is not None:
        identity = conv2d_bn_act(x, p['down'], stride=s, padding=0)
    else:
        identity = x
    out = conv2d_bn_act(x, p['c1'], stride=1, padding=0, relu=True)
    out = conv2d_bn_act(out, p['c2'], stride=s, padding=1, relu=True)
    out = conv2d_bn_act(out, p['c3'], stride=1, padding=0, relu=True,
                        residual=identity)
    return out


def decoder_forward(dp, x, m1, m2, m3):
    x = upformer_forward(dp['tr0'], x, relu=True)
    x = jnp.concatenate([x, m1], axis=-1)
    x = upformer_forward(dp['tr1'], x, relu=True)
    x = jnp.concatenate([x, m2], axis=-1)
    x = upformer_forward(dp['tr2'], x, relu=True)
    x = jnp.concatenate([x, m3], axis=-1)
    x = upformer_forward(dp['tr3'], x, relu=True)
    x = upformer_forward(dp['tr4'], x, relu=True)
    return x


def nearest_upsample(x, size):
    # nn.Upsample(size=..., mode='nearest'): src = floor(dst * in/out)
    N, H, W, C = x.shape
    OH, OW = size
    ri = jnp.floor(jnp.arange(OH) * (H / OH)).astype(jnp.int32)
    ci = jnp.floor(jnp.arange(OW) * (W / OW)).astype(jnp.int32)
    return x[:, ri][:, :, ci]


def resnet_forward(P, x_nchw, output_size):
    # TODO(synk): BatchNorms use eval-mode synthetic stats (gamma=1, beta=0,
    # mean=0, var=1); the identity affine is skipped in the fused matmul
    # epilogue (the scale/bias path stays available for real BN stats).
    x = jnp.transpose(x_nchw, (0, 2, 3, 1)).astype(jnp.bfloat16)   # -> NHWC
    x = conv2d_bn_act(x, P['conv1'], stride=2, padding=3, relu=True)
    x = maxpool_3x3_s2_p1(x)
    for blk in P['layer1']:
        x = bottleneck_forward(blk, x)
    m3 = x
    for blk in P['layer2']:
        x = bottleneck_forward(blk, x)
    m2 = x
    for blk in P['layer3']:
        x = bottleneck_forward(blk, x)
    m1 = x
    for blk in P['layer4']:
        x = bottleneck_forward(blk, x)
    x = conv2d_bn_act(x, P['conv2'], stride=1, padding=0, relu=False)  # +bn2
    x = decoder_forward(P['decoder'], x, m1, m2, m3)
    x = conv2d_bn_act(x, P['conv3'], stride=1, padding=1, relu=False)
    x = nearest_upsample(x, output_size)
    return jnp.transpose(x, (0, 3, 1, 2)).astype(jnp.float32)      # -> NCHW


if __name__ == "__main__":
    B, C, H, W = 2, 4, 32, 32            # in_channels=4 is forced in __init__
    output_size = (64, 64)
    x = jax.random.normal(jax.random.PRNGKey(0), (B, C, H, W), jnp.float32)
    params = init_params(seed=0, in_channels=C)
    y = resnet_forward(params, x, output_size)
    y = jax.block_until_ready(y)
    assert y.shape == (B, 1, output_size[0], output_size[1]), y.shape
    print("KERNEL_OK")
</pallas_src>

<mosaic_0001>
module attributes {stable_mosaic.version = 11 : i64} {
  func.func @kern(%arg0: i32, %arg1: i32, %arg2: memref<256x256xbf16, #tpu.memory_space<vmem>>, %arg3: memref<256x128xbf16, #tpu.memory_space<vmem>>, %arg4: memref<256x128xbf16, #tpu.memory_space<vmem>>) attributes {dimension_semantics = [#tpu.dimension_semantics<parallel>, #tpu.dimension_semantics<parallel>], iteration_bounds = array<i64: 2, 1>, scalar_prefetch = 0 : i64, scratch_operands = 0 : i64, tpu.core_type = #tpu.core_type<tc>, window_params = [{transform_indices = @transform_0, window_bounds = array<i64: 256, 256>}, {transform_indices = @transform_1, window_bounds = array<i64: 256, 128>}, {transform_indices = @transform_2, window_bounds = array<i64: 256, 128>}]} {
    %c0 = arith.constant 0 : index
    %c0_0 = arith.constant 0 : index
    %0 = vector.load %arg2[%c0, %c0_0] : memref<256x256xbf16, #tpu.memory_space<vmem>>, vector<256x256xbf16>
    %c0_1 = arith.constant 0 : index
    %c0_2 = arith.constant 0 : index
    %1 = vector.load %arg3[%c0_1, %c0_2] : memref<256x128xbf16, #tpu.memory_space<vmem>>, vector<256x128xbf16>
    %cst = arith.constant dense<0.000000e+00> : vector<256x128xf32>
    %2 = tpu.matmul %0, %1, %cst {dimension_numbers = #tpu.dot_dimension_numbers<[1], [0], [0], [1], [0, 0, 1, 1], [], []>} : vector<256x256xbf16>, vector<256x128xbf16>, vector<256x128xf32> -> vector<256x128xf32>
    %cst_3 = arith.constant 0.000000e+00 : f32
    %3 = vector.broadcast %cst_3 : f32 to vector<256x128xf32>
    %4 = arith.maximumf %2, %3 : vector<256x128xf32>
    %5 = arith.truncf %4 : vector<256x128xf32> to vector<256x128xbf16>
    %c0_4 = arith.constant 0 : index
    %c0_5 = arith.constant 0 : index
    %6 = vector.load %arg4[%c0_4, %c0_5] : memref<256x128xbf16, #tpu.memory_space<vmem>>, vector<256x128xbf16>
    tpu.vector_store %arg4[%c0_4, %c0_5], %5 {strides = array<i32>} : memref<256x128xbf16, #tpu.memory_space<vmem>>, vector<256x128xbf16>,
    return
  }
  func.func @transform_0(%arg0: i32, %arg1: i32) -> (i32, i32) {
    %c0_i32 = arith.constant 0 : i32
    %c0_i32_0 = arith.constant 0 : i32
    return %arg0, %c0_i32 : i32, i32
  }
  func.func @transform_1(%arg0: i32, %arg1: i32) -> (i32, i32) {
    %c0_i32 = arith.constant 0 : i32
    %c0_i32_0 = arith.constant 0 : i32
    return %c0_i32, %arg1 : i32, i32
  }
  func.func @transform_2(%arg0: i32, %arg1: i32) -> (i32, i32) {
    %c0_i32 = arith.constant 0 : i32
    return %arg0, %arg1 : i32, i32
  }
}

</mosaic_0001>

<bundles_post_ra>
// kernel: tpu_custom_call.1
= control target key start
LH: loop header
LB: loop body
LE: loop exit
PB: predicated region body
PF: predicated region fallthrough
CT: control target
= control target key end

     0   :  { %7 = vsyncpa [#allocation3], 0  ;;  %s1767_s0 = inlined_call_operand.hbm [shape: bf16[512,256], index: 0, kind: input, shape index: {}]   ;;  %s1768_s1 = inlined_call_operand.hbm [shape: bf16[256,128], index: 1, kind: input, shape index: {}]   ;;  %s1769_s2 = inlined_call_operand.hbm [shape: bf16[512,128], index: 2, kind: output, shape index: {}]  }
   0x1   :  { %9 = vsyncpa [#allocation3 + $0x1], 0 }
   0x2   :  { %10 = vsyncpa [#allocation6], 0 }
   0x3   :  { %11 = vsyncpa [#allocation4], 0 }
   0x4   :  { %13 = vsyncpa [#allocation4 + $0x1], 0  ;;  %s1532_s9 = smov 0   ;;  %s1534_s10 = smov 0  }
   0x5   :  { %s1536_s11 = smov 0   ;;  %s1538_s12 = smov 0  }
   0x6   :  { %s1540_s13 = smov 0   ;;  %s1542_s14 = smov 0  }
   0x7 LB: > { %s911_s15 = sadd.s32 4294967295, %s1508_s14   ;;  %s912_s16 = sadd.s32 4294967294, %s1508_s14   ;;  %s1508_s14 = sphi %s1542_s14, %s19_s14   ;;  %s1504_s13 = sphi %s1540_s13, %s1781_s13   ;;  %s1500_s12 = sphi %s1538_s12, %s1780_s12   ;;  %s1496_s11 = sphi %s1536_s11, %s1779_s11   ;;  %s1492_s10 = sphi %s1534_s10, %s1778_s10   ;;  %s1488_s9 = sphi %s1532_s9, %s1777_s9  }
   0x8   : > { %p51_p0 = scmp.ne.s32.totalorder %s1492_s10, %s1488_s9  ;;  %p1566_p1 = scmp.eq.s32.totalorder %s911_s15, 0 }
   0x9   : > { %p1570_p2 = scmp.eq.s32.totalorder %s911_s15, 1  ;;  %p109_p3 = scmp.eq.s32.totalorder %s912_s16, 1 }
   0xa   : > { %p1576_p4 = por %p1566_p1, %p51_p0  ;;  %p913_p5 = scmp.ge.s32.totalorder %s1508_s14, 1 }
   0xb   : > { %p1581_p6 = por %p109_p3, %p51_p0  ;;  %p116_p7 = scmp.lt.s32.totalorder %s1508_s14, 3 }
   0xc   : > { %s129_s23 = sshll.u32 %s1768_s1, 4  ;;  %s1510_s25 = smov [#allocation5]   ;;  %s130_s23 = int_to_ptr.hbm [resolvable:$true] %s129_s23 }
   0xd   : > { %p1589_p8 = pnand %p913_p5, %p116_p7  ;;  %s131_s26 = sshll.u32 %s1510_s25, 4  ;;  %s132_s26 = int_to_ptr.vmem [resolvable:$true] %s131_s26 }
   0xe   : > { %p915_p11 = scmp.ge.s32.totalorder %s1508_s14, 2  ;;  %s1511_s27 = smov 64  }
   0xf   : > { %p1291_p9 = pneg %p1589_p8  ;;  %s1512_s28 = smov 4  }
  0x10   : > { %s31_s29 = sadd.s32 1, %s1504_s13  ;;  %s38_s30 = sadd.s32 1, %s1496_s11 }
  0x11   : > { %p1292_p10 = pnand %p1291_p9, %p1566_p1  ;;  %p33_p12 = scmp.ge.s32.totalorder %s31_s29, 2 }
  0x12   : > { %p45_p13 = scmp.ne.s32.totalorder %s1496_s11, %s1492_s10  ;;  %p46_p0 = scmp.eq.s32.totalorder %s1508_s14, 0 }
  0x13   : > { %1294 = dma.hbm_to_vmem [thread:$0]  (!%p1292_p10), %s130_s23, 2048, %s132_s26, [#allocation6], %s1511_s27, %s1511_s27, %s1512_s28  }
  0x14   : > { %s1783_s29 = smov (%p33_p12, %s31_s29), 0  ;;  %p1605_p3 = por %p46_p0, %p45_p13 }
  0x15   : > { %p1611_p5 = por %p1570_p2, %p45_p13  ;;  %s35_s5 = ssub.s32 %s1504_s13, %s1783_s29 }
  0x16   : > { %p1304_p7 = scmp.lt.s32.totalorder %s1508_s14, 2  ;;  %p36_p9 = scmp.eq.s32.totalorder %s35_s5, 0 }
  0x17   : > { %s145_s6 = sand.u32 1, %s1496_s11   ;;  %s1122_s15 = sshll.u32 %s1504_s13, 8 }
  0x18   : > { %s916_s7 = sshll.u32 %s145_s6, 8  ;;  %s155_s22 = scalar_lea.hbm %s1767_s0, %s1122_s15 }
  0x19   : > { %s1620_s8 = scalar_select %p36_p9, %s1496_s11, %s38_s30  }
  0x1a   : > { %s149_s23 = scalar_lea.vmem [#allocation2], %s916_s7  ;;  %s156_s18 = sshll.u32 %s155_s22, 4  ;;  %s157_s18 = int_to_ptr.hbm [resolvable:$true] %s156_s18 }
  0x1b   : > { %s158_s25 = sshll.u32 %s149_s23, 4  ;;  %p1296_p2 = pnand %p1304_p7, %p1605_p3  ;;  %s159_s25 = int_to_ptr.vmem [resolvable:$true] %s158_s25 }
  0x1c   : > { %s146_s26 = scalar_lea.sflag [#allocation3], %s145_s6  ;;  %s1513_s27 = smov 128  }
  0x1d   : > { %s1514_s28 = smov 8   ;;  %170 = sbr.rel (%p1589_p8) target bundleno = 332 (0x14c), region = 28 }
  0x1e   : > { %1298 = dma.hbm_to_vmem [thread:$0]  (!%p1296_p2), %s157_s18, 4096, %s159_s25, %s146_s26, %s1513_s27, %s1513_s27, %s1514_s28  }
  0x1f   : > { %s1631_s30 = sand.u32 (!%p1589_p8), 1, %s1492_s10  }
  0x20   : > { %s921_s5 = sshll.u32 (!%p1589_p8), %s1631_s30, 8  ;;  %s173_s7 = scalar_lea.sflag (!%p1589_p8), [#allocation3], %s1631_s30 }
  0x21   : > { %s1635_s15 = scalar_lea.vmem (!%p1589_p8), [#allocation2], %s921_s5 }
  0x22   : > { %1475 = dma.done.wait (%p1576_p4), %s173_s7, 4096  }
  0x23   : > { %1477 = vsyncadd (%p1576_p4), %s173_s7, 4294963200 }
  0x24   : > { %1479 = dma.done.wait (%p1566_p1), [#allocation6], 2048  }
  0x25   : > { %1481 = vsyncadd (%p1566_p1), [#allocation6], 4294965248  ;;  %v1162_v0 = vld [vmem:[#allocation5 + $0x38] sm:$0xff]  ;;  %v1161_v2 = vld [vmem:[#allocation5 + $0x30] sm:$0xff]  ;;  %s923_s17 = sshll.u32 %s1631_s30, 7  ;;  %s1171_s24 = sshll.u32 %s1500_s12, 7 }
  0x26   : > { %v1170_v1 = vld [vmem:[#allocation5 + $0x78] sm:$0xff]  ;;  %525 = vmatpush.bf16.msra.mxu0 %v1162_v0  ;;  %1267 = vmatpush.bf16.msra.mxu2 %v1162_v0  ;;  %v1169_v3 = vld [vmem:[#allocation5 + $0x70] sm:$0xff]  ;;  %v1160_v4 = vld [vmem:[#allocation5 + $0x28] sm:$0xff]  ;;  %s1710_s19 = scalar_lea.vmem [#allocation7], %s923_s17  ;;  %s812_s16 = scalar_lea.hbm %s1769_s2, %s1171_s24 }
  0x27   : > { %614 = vmatpush.bf16.msra.mxu1 %v1170_v1  ;;  %1275 = vmatpush.bf16.msra.mxu3 %v1170_v1  ;;  %v1168_v5 = vld [vmem:[#allocation5 + $0x68] sm:$0xff]  ;;  %v1159_v6 = vld [vmem:[#allocation5 + $0x20] sm:$0xff]  ;;  %v1158_v8 = vld [vmem:[#allocation5 + $0x18] sm:$0xff]  ;;  %s813_s21 = sshll.u32 %s1710_s19, 4  ;;  %s815_s22 = sshll.u32 %s812_s16, 4  ;;  %s814_s21 = int_to_ptr.vmem [resolvable:$true] %s813_s21  ;;  %s816_s22 = int_to_ptr.hbm [resolvable:$true] %s815_s22 }
  0x28   : > { %v1167_v7 = vld [vmem:[#allocation5 + $0x60] sm:$0xff]  ;;  %v1166_v9 = vld [vmem:[#allocation5 + $0x58] sm:$0xff]  ;;  %v1157_v10 = vld [vmem:[#allocation5 + $0x10] sm:$0xff]  ;;  %s800_s12 = scalar_lea.sflag [#allocation4], %s1631_s30  ;;  %s1436_s23 = sshra.s32 %s816_s22, 4  ;;  %s1437_s23 = int_to_ptr.hbm [resolvable:$true] %s1436_s23 }
  0x29   : > { %v1165_v11 = vld [vmem:[#allocation5 + $0x50] sm:$0xff]  ;;  %v1156_v12 = vld [vmem:[#allocation5 + $0x8] sm:$0xff]  ;;  %v1155_v14 = vld [vmem:[#allocation5] sm:$0xff]  ;;  %s1438_s25 = scalar_lea.hbm %s1437_s23, 128  ;;  %s1442_s27 = scalar_lea.hbm %s1769_s2, 256 }
  0x2a   : > { %526 = vmatpush.bf16.msra.mxu0 %v1161_v2  ;;  %1268 = vmatpush.bf16.msra.mxu2 %v1161_v2  ;;  %v1164_v13 = vld [vmem:[#allocation5 + $0x48] sm:$0xff]  ;;  %v1163_v15 = vld [vmem:[#allocation5 + $0x40] sm:$0xff]  ;;  %v934_v28 = vld [vmem:[%s1635_s15 + $0x10] sm:$0xf]  ;;  %p1439_p1 = scmp.ne.s32.totalorder %s1437_s23, %s1438_s25  ;;  %p1443_p10 = scmp.lt.s32.totalorder %s1437_s23, %s1769_s2 }
  0x2b   : > { %615 = vmatpush.bf16.msra.mxu1 %v1169_v3  ;;  %1276 = vmatpush.bf16.msra.mxu3 %v1169_v3  ;;  %v926_v16 = vld [vmem:[%s1635_s15] sm:$0xf]  ;;  %v1124_v17 = vld [vmem:[%s1635_s15 + $0x4] sm:$0xf0]  ;;  %v1123_v20 = vld [vmem:[%s1635_s15 + $0x4] sm:$0xf]  ;;  %p1444_p12 = scmp.lt.s32.totalorder %s1442_s27, %s1438_s25 }
  0x2c   : > { %v990_v18 = vld [vmem:[%s1635_s15 + $0x80] sm:$0xf]  ;;  %v1140_v19 = vld [vmem:[%s1635_s15 + $0x84] sm:$0xf0]  ;;  %v928_v21 = vld [vmem:[%s1635_s15 + $0x8] sm:$0xf0]  ;;  %v927_v24 = vor.u32 %v1124_v17, %v926_v16  ;;  %p1440_p4 = pnand %p1439_p1, %p1611_p5 }
  0x2d   : > { %v1139_v22 = vld [vmem:[%s1635_s15 + $0x84] sm:$0xf]  ;;  %v992_v23 = vld [vmem:[%s1635_s15 + $0x88] sm:$0xf0]  ;;  %v991_v25 = vor.u32 %v1140_v19, %v990_v18  ;;  %v931_v26 = vor.u32 %v1123_v20, %v928_v21  ;;  %v1126_v29 = vld [vmem:[%s1635_s15 + $0x14] sm:$0xf0]  ;;  %p1445_p13 = por %p1444_p12, %p1443_p10 }
  0x2e   : > { %527 = vmatpush.bf16.msra.mxu0 %v1160_v4  ;;  %1269 = vmatpush.bf16.msra.mxu2 %v1160_v4  ;;  %v995_v27 = vor.u32 %v1139_v22, %v992_v23  ;;  %v998_v30 = vld [vmem:[%s1635_s15 + $0x90] sm:$0xf]  ;;  %v1142_v31 = vld [vmem:[%s1635_s15 + $0x94] sm:$0xf0]  ;;  %v1125_v32 = vld [vmem:[%s1635_s15 + $0x14] sm:$0xf]  ;;  %v935_v36 = vor.u32 %v1126_v29, %v934_v28  ;;  %p1441_p8 = pneg %p1440_p4 }
  0x2f   : > { %616 = vmatpush.bf16.msra.mxu1 %v1168_v5  ;;  %1277 = vmatpush.bf16.msra.mxu3 %v1168_v5  ;;  %v936_v33 = vld [vmem:[%s1635_s15 + $0x18] sm:$0xf0]  ;;  %v1141_v34 = vld [vmem:[%s1635_s15 + $0x94] sm:$0xf]  ;;  %v999_v37 = vor.u32 %v1142_v31, %v998_v30  ;;  %v942_v40 = vld [vmem:[%s1635_s15 + $0x20] sm:$0xf] }
  0x30   : > { %v1000_v35 = vld [vmem:[%s1635_s15 + $0x98] sm:$0xf0]  ;;  %v939_v38 = vor.u32 %v1125_v32, %v936_v33  ;;  %v1128_v41 = vld [vmem:[%s1635_s15 + $0x24] sm:$0xf0]  ;;  %v1006_v42 = vld [vmem:[%s1635_s15 + $0xa0] sm:$0xf]  ;;  %p1446_p0 = pnand %p1445_p13, %p1441_p8 }
  0x31   : > { %v1003_v39 = vor.u32 %v1141_v34, %v1000_v35  ;;  %v1144_v43 = vld [vmem:[%s1635_s15 + $0xa4] sm:$0xf0]  ;;  %v1127_v44 = vld [vmem:[%s1635_s15 + $0x24] sm:$0xf]  ;;  %v944_v45 = vld [vmem:[%s1635_s15 + $0x28] sm:$0xf0]  ;;  %v943_v48 = vor.u32 %v1128_v41, %v942_v40 }
  0x32   : > { %528 = vmatpush.bf16.msra.mxu0 %v1159_v6  ;;  %1270 = vmatpush.bf16.msra.mxu2 %v1159_v6  ;;  %v1143_v46 = vld [vmem:[%s1635_s15 + $0xa4] sm:$0xf]  ;;  %v1008_v47 = vld [vmem:[%s1635_s15 + $0xa8] sm:$0xf0]  ;;  %v1007_v49 = vor.u32 %v1144_v43, %v1006_v42  ;;  %v947_v50 = vor.u32 %v1127_v44, %v944_v45  ;;  %v950_v52 = vld [vmem:[%s1635_s15 + $0x30] sm:$0xf] }
  0x33   : > { %617 = vmatpush.bf16.msra.mxu1 %v1167_v7  ;;  %1278 = vmatpush.bf16.msra.mxu3 %v1167_v7  ;;  %v1011_v51 = vor.u32 %v1143_v46, %v1008_v47  ;;  %v1130_v53 = vld [vmem:[%s1635_s15 + $0x34] sm:$0xf0]  ;;  %v1014_v54 = vld [vmem:[%s1635_s15 + $0xb0] sm:$0xf]  ;;  %v1129_v56 = vld [vmem:[%s1635_s15 + $0x34] sm:$0xf] }
  0x34   : > { %v1146_v55 = vld [vmem:[%s1635_s15 + $0xb4] sm:$0xf0]  ;;  %v952_v57 = vld [vmem:[%s1635_s15 + $0x38] sm:$0xf0]  ;;  %v1145_v58 = vld [vmem:[%s1635_s15 + $0xb4] sm:$0xf]  ;;  %v951_v60 = vor.u32 %v1130_v53, %v950_v52 }
  0x35   : > { %v1016_v59 = vld [vmem:[%s1635_s15 + $0xb8] sm:$0xf0]  ;;  %v1015_v61 = vor.u32 %v1146_v55, %v1014_v54  ;;  %v955_v62 = vor.u32 %v1129_v56, %v952_v57  ;;  %v958_v0 = vld [vmem:[%s1635_s15 + $0x40] sm:$0xf]  ;;  %v1132_v1 = vld [vmem:[%s1635_s15 + $0x44] sm:$0xf0] }
  0x36   : > { %529 = vmatpush.bf16.msra.mxu0 %v1158_v8  ;;  %1271 = vmatpush.bf16.msra.mxu2 %v1158_v8  ;;  %v1019_v63 = vor.u32 %v1145_v58, %v1016_v59  ;;  %v1022_v2 = vld [vmem:[%s1635_s15 + $0xc0] sm:$0xf]  ;;  %v1148_v3 = vld [vmem:[%s1635_s15 + $0xc4] sm:$0xf0]  ;;  %v1131_v4 = vld [vmem:[%s1635_s15 + $0x44] sm:$0xf]  ;;  %v959_v8 = vor.u32 %v1132_v1, %v958_v0 }
  0x37   : > { %618 = vmatpush.bf16.msra.mxu1 %v1166_v9  ;;  %1279 = vmatpush.bf16.msra.mxu3 %v1166_v9  ;;  %v960_v5 = vld [vmem:[%s1635_s15 + $0x48] sm:$0xf0]  ;;  %v1147_v6 = vld [vmem:[%s1635_s15 + $0xc4] sm:$0xf]  ;;  %v1023_v9 = vor.u32 %v1148_v3, %v1022_v2  ;;  %v1133_v16 = vld [vmem:[%s1635_s15 + $0x54] sm:$0xf] }
  0x38   : > { %v1024_v7 = vld [vmem:[%s1635_s15 + $0xc8] sm:$0xf0]  ;;  %v968_v17 = vld [vmem:[%s1635_s15 + $0x58] sm:$0xf0]  ;;  %v1149_v18 = vld [vmem:[%s1635_s15 + $0xd4] sm:$0xf] }
  0x39   : > { %v1032_v19 = vld [vmem:[%s1635_s15 + $0xd8] sm:$0xf0]  ;;  %v971_v22 = vor.u32 %v1133_v16, %v968_v17  ;;  %v1135_v28 = vld [vmem:[%s1635_s15 + $0x64] sm:$0xf]  ;;  %v976_v29 = vld [vmem:[%s1635_s15 + $0x68] sm:$0xf0] }
  0x3a   : > { %530 = vmatpush.bf16.msra.mxu0 %v1157_v10  ;;  %1272 = vmatpush.bf16.msra.mxu2 %v1157_v10  ;;  %v963_v10 = vor.u32 %v1131_v4, %v960_v5  ;;  %v1035_v23 = vor.u32 %v1149_v18, %v1032_v19  ;;  %v1151_v30 = vld [vmem:[%s1635_s15 + $0xe4] sm:$0xf]  ;;  %v1040_v31 = vld [vmem:[%s1635_s15 + $0xe8] sm:$0xf0]  ;;  %v979_v34 = vor.u32 %v1135_v28, %v976_v29  ;;  %v1137_v40 = vld [vmem:[%s1635_s15 + $0x74] sm:$0xf] }
  0x3b   : > { %619 = vmatpush.bf16.msra.mxu1 %v1165_v11  ;;  %1280 = vmatpush.bf16.msra.mxu3 %v1165_v11  ;;  %v1027_v11 = vor.u32 %v1147_v6, %v1024_v7  ;;  %v1043_v35 = vor.u32 %v1151_v30, %v1040_v31  ;;  %v984_v41 = vld [vmem:[%s1635_s15 + $0x78] sm:$0xf0]  ;;  %v1153_v42 = vld [vmem:[%s1635_s15 + $0xf4] sm:$0xf] }
  0x3c   : > { %v1048_v43 = vld [vmem:[%s1635_s15 + $0xf8] sm:$0xf0]  ;;  %v987_v46 = vor.u32 %v1137_v40, %v984_v41 }
  0x3d   : > { %v1051_v47 = vor.u32 %v1153_v42, %v1048_v43 }
  0x3e   : > { %531 = vmatpush.bf16.msra.mxu0 %v1156_v12  ;;  %1273 = vmatpush.bf16.msra.mxu2 %v1156_v12  ;;  %v966_v12 = vld [vmem:[%s1635_s15 + $0x50] sm:$0xf] }
  0x3f   : > { %620 = vmatpush.bf16.msra.mxu1 %v1164_v13  ;;  %1281 = vmatpush.bf16.msra.mxu3 %v1164_v13  ;;  %v1134_v13 = vld [vmem:[%s1635_s15 + $0x54] sm:$0xf0] }
  0x40   : > { %v967_v20 = vor.u32 %v1134_v13, %v966_v12 }
  0x42   : > { %532 = vmatpush.bf16.msra.mxu0 %v1155_v14  ;;  %1274 = vmatpush.bf16.msra.mxu2 %v1155_v14  ;;  %v1030_v14 = vld [vmem:[%s1635_s15 + $0xd0] sm:$0xf] }
  0x43   : > { %621 = vmatpush.bf16.msra.mxu1 %v1163_v15  ;;  %1282 = vmatpush.bf16.msra.mxu3 %v1163_v15  ;;  %v1150_v15 = vld [vmem:[%s1635_s15 + $0xd4] sm:$0xf0] }
  0x44   : > { %v1031_v21 = vor.u32 %v1150_v15, %v1030_v14 }
  0x45   : > { %533 = vmatmul.bf16.vlgmr.msra.gmra.mxu0 %v927_v24  ;;  %573 = vmatmul.bf16.vlgmr.msra.gmra.mxu2 %v991_v25  ;;  %v974_v24 = vld [vmem:[%s1635_s15 + $0x60] sm:$0xf]  ;;  %v1136_v25 = vld [vmem:[%s1635_s15 + $0x64] sm:$0xf0] }
  0x46   : > { %622 = vmatmul.bf16.vlgmr.msra.gmra.mxu1 %v931_v26  ;;  %662 = vmatmul.bf16.vlgmr.msra.gmra.mxu3 %v995_v27  ;;  %v1038_v26 = vld [vmem:[%s1635_s15 + $0xe0] sm:$0xf]  ;;  %v1152_v27 = vld [vmem:[%s1635_s15 + $0xe4] sm:$0xf0]  ;;  %v975_v32 = vor.u32 %v1136_v25, %v974_v24 }
  0x47   : > { %v1039_v33 = vor.u32 %v1152_v27, %v1038_v26 }
  0x55   : > { %538 = vmatmul.bf16.gmra.mxu0 %v935_v36  ;;  %578 = vmatmul.bf16.gmra.mxu2 %v999_v37  ;;  %v982_v36 = vld [vmem:[%s1635_s15 + $0x70] sm:$0xf]  ;;  %v1138_v37 = vld [vmem:[%s1635_s15 + $0x74] sm:$0xf0] }
  0x56   : > { %627 = vmatmul.bf16.gmra.mxu1 %v939_v38  ;;  %667 = vmatmul.bf16.gmra.mxu3 %v1003_v39  ;;  %v1046_v38 = vld [vmem:[%s1635_s15 + $0xf0] sm:$0xf]  ;;  %v1154_v39 = vld [vmem:[%s1635_s15 + $0xf4] sm:$0xf0]  ;;  %v983_v44 = vor.u32 %v1138_v37, %v982_v36 }
  0x57   : > { %v1047_v45 = vor.u32 %v1154_v39, %v1046_v38 }
  0x65   : > { %543 = vmatmul.bf16.gmra.mxu0 %v943_v48  ;;  %583 = vmatmul.bf16.gmra.mxu2 %v1007_v49 }
  0x66   : > { %632 = vmatmul.bf16.gmra.mxu1 %v947_v50  ;;  %672 = vmatmul.bf16.gmra.mxu3 %v1011_v51 }
  0x75   : > { %548 = vmatmul.bf16.gmra.mxu0 %v951_v60  ;;  %588 = vmatmul.bf16.gmra.mxu2 %v1015_v61 }
  0x76   : > { %637 = vmatmul.bf16.gmra.mxu1 %v955_v62  ;;  %677 = vmatmul.bf16.gmra.mxu3 %v1019_v63 }
  0x85   : > { %553 = vmatmul.bf16.gmra.mxu0 %v959_v8  ;;  %593 = vmatmul.bf16.gmra.mxu2 %v1023_v9 }
  0x86   : > { %642 = vmatmul.bf16.gmra.mxu1 %v963_v10  ;;  %682 = vmatmul.bf16.gmra.mxu3 %v1027_v11 }
  0x95   : > { %558 = vmatmul.bf16.gmra.mxu0 %v967_v20  ;;  %598 = vmatmul.bf16.gmra.mxu2 %v1031_v21 }
  0x96   : > { %647 = vmatmul.bf16.gmra.mxu1 %v971_v22  ;;  %687 = vmatmul.bf16.gmra.mxu3 %v1035_v23 }
  0xa5   : > { %563 = vmatmul.bf16.gmra.mxu0 %v975_v32  ;;  %603 = vmatmul.bf16.gmra.mxu2 %v1039_v33 }
  0xa6   : > { %652 = vmatmul.bf16.gmra.mxu1 %v979_v34  ;;  %692 = vmatmul.bf16.gmra.mxu3 %v1043_v35 }
  0xb5   : > { %568 = vmatmul.bf16.gmra.mxu0 %v983_v44  ;;  %608 = vmatmul.bf16.gmra.mxu2 %v1047_v45 }
  0xb6   : > { %657 = vmatmul.bf16.gmra.mxu1 %v987_v46  ;;  %697 = vmatmul.bf16.gmra.mxu3 %v1051_v47 }
  0xc2   : > { %v534_v48 = vpop.f32.mrf.mxu0 }
  0xc3   : > { %v623_v49 = vpop.f32.mrf.mxu1 }
  0xc4   : > { %v624_v52 = vadd.f32 %v623_v49, %v534_v48 }
  0xc6   : > { %v703_v56 = vmax.f32 %v624_v52, 0.0 }
  0xc8   : > { %v574_v50 = vpop.f32.mrf.mxu2 }
  0xc9   : > { %v663_v51 = vpop.f32.mrf.mxu3 }
  0xca   : > { %v536_v53 = vpop.f32.mrf.mxu0  ;;  %v664_v58 = vadd.f32 %v663_v51, %v574_v50 }
  0xcb   : > { %v625_v54 = vpop.f32.mrf.mxu1 }
  0xcc   : > { %v626_v55 = vadd.f32 %v625_v54, %v536_v53  ;;  %v719_v1 = vmax.f32 %v664_v58, 0.0 }
  0xce   : > { %v704_v57 = vmax.f32 %v626_v55, 0.0 }
  0xd0   : > { %v1175_v59 = vpack.c.bf16 %v704_v57, %v703_v56  ;;  %v576_v60 = vpop.f32.mrf.mxu2 }
  0xd1   : > { %v665_v61 = vpop.f32.mrf.mxu3 }
  0xd2   : > { %1176 = vst [vmem:[%s1710_s19] sm:$0xff] %v1175_v59   ;;  %v666_v62 = vadd.f32 %v665_v61, %v576_v60  ;;  %v539_v63 = vpop.f32.mrf.mxu0 }
  0xd3   : > { %v628_v0 = vpop.f32.mrf.mxu1 }
  0xd4   : > { %v720_v2 = vmax.f32 %v666_v62, 0.0  ;;  %v629_v6 = vadd.f32 %v628_v0, %v539_v63 }
  0xd6   : > { %v1215_v3 = vpack.c.bf16 %v720_v2, %v719_v1  ;;  %v705_v10 = vmax.f32 %v629_v6, 0.0 }
  0xd8   : > { %1259 = vst [vmem:[%s1710_s19 + $0x40] sm:$0xff] %v1215_v3   ;;  %v579_v4 = vpop.f32.mrf.mxu2 }
  0xd9   : > { %v668_v5 = vpop.f32.mrf.mxu3 }
  0xda   : > { %v541_v7 = vpop.f32.mrf.mxu0  ;;  %v669_v12 = vadd.f32 %v668_v5, %v579_v4 }
  0xdb   : > { %v630_v8 = vpop.f32.mrf.mxu1 }
  0xdc   : > { %v631_v9 = vadd.f32 %v630_v8, %v541_v7  ;;  %v721_v19 = vmax.f32 %v669_v12, 0.0 }
  0xde   : > { %v706_v11 = vmax.f32 %v631_v9, 0.0 }
  0xe0   : > { %v1180_v13 = vpack.c.bf16 %v706_v11, %v705_v10  ;;  %v581_v14 = vpop.f32.mrf.mxu2 }
  0xe1   : > { %v670_v15 = vpop.f32.mrf.mxu3 }
  0xe2   : > { %1252 = vst [vmem:[%s1710_s19 + $0x8] sm:$0xff] %v1180_v13   ;;  %v671_v16 = vadd.f32 %v670_v15, %v581_v14  ;;  %v544_v17 = vpop.f32.mrf.mxu0 }
  0xe3   : > { %v633_v18 = vpop.f32.mrf.mxu1 }
  0xe4   : > { %v722_v20 = vmax.f32 %v671_v16, 0.0  ;;  %v634_v24 = vadd.f32 %v633_v18, %v544_v17 }
  0xe6   : > { %v1220_v21 = vpack.c.bf16 %v722_v20, %v721_v19  ;;  %v707_v28 = vmax.f32 %v634_v24, 0.0 }
  0xe8   : > { %1260 = vst [vmem:[%s1710_s19 + $0x48] sm:$0xff] %v1220_v21   ;;  %v584_v22 = vpop.f32.mrf.mxu2 }
  0xe9   : > { %v673_v23 = vpop.f32.mrf.mxu3 }
  0xea   : > { %v546_v25 = vpop.f32.mrf.mxu0  ;;  %v674_v30 = vadd.f32 %v673_v23, %v584_v22 }
  0xeb   : > { %v635_v26 = vpop.f32.mrf.mxu1 }
  0xec   : > { %v636_v27 = vadd.f32 %v635_v26, %v546_v25  ;;  %v723_v37 = vmax.f32 %v674_v30, 0.0 }
  0xee   : > { %v708_v29 = vmax.f32 %v636_v27, 0.0 }
  0xf0   : > { %v1185_v31 = vpack.c.bf16 %v708_v29, %v707_v28  ;;  %v586_v32 = vpop.f32.mrf.mxu2 }
  0xf1   : > { %v675_v33 = vpop.f32.mrf.mxu3 }
  0xf2   : > { %1253 = vst [vmem:[%s1710_s19 + $0x10] sm:$0xff] %v1185_v31   ;;  %v676_v34 = vadd.f32 %v675_v33, %v586_v32  ;;  %v549_v35 = vpop.f32.mrf.mxu0 }
  0xf3   : > { %v638_v36 = vpop.f32.mrf.mxu1 }
  0xf4   : > { %v724_v38 = vmax.f32 %v676_v34, 0.0  ;;  %v639_v42 = vadd.f32 %v638_v36, %v549_v35 }
  0xf6   : > { %v1225_v39 = vpack.c.bf16 %v724_v38, %v723_v37  ;;  %v709_v46 = vmax.f32 %v639_v42, 0.0 }
  0xf8   : > { %1261 = vst [vmem:[%s1710_s19 + $0x50] sm:$0xff] %v1225_v39   ;;  %v589_v40 = vpop.f32.mrf.mxu2 }
  0xf9   : > { %v678_v41 = vpop.f32.mrf.mxu3 }
  0xfa   : > { %v551_v43 = vpop.f32.mrf.mxu0  ;;  %v679_v48 = vadd.f32 %v678_v41, %v589_v40 }
  0xfb   : > { %v640_v44 = vpop.f32.mrf.mxu1 }
  0xfc   : > { %v641_v45 = vadd.f32 %v640_v44, %v551_v43  ;;  %v725_v55 = vmax.f32 %v679_v48, 0.0 }
  0xfe   : > { %v710_v47 = vmax.f32 %v641_v45, 0.0 }
 0x100   : > { %v1190_v49 = vpack.c.bf16 %v710_v47, %v709_v46  ;;  %v591_v50 = vpop.f32.mrf.mxu2 }
 0x101   : > { %v680_v51 = vpop.f32.mrf.mxu3 }
 0x102   : > { %1254 = vst [vmem:[%s1710_s19 + $0x18] sm:$0xff] %v1190_v49   ;;  %v681_v52 = vadd.f32 %v680_v51, %v591_v50  ;;  %v554_v53 = vpop.f32.mrf.mxu0 }
 0x103   : > { %v643_v54 = vpop.f32.mrf.mxu1 }
 0x104   : > { %v726_v56 = vmax.f32 %v681_v52, 0.0  ;;  %v644_v60 = vadd.f32 %v643_v54, %v554_v53 }
 0x106   : > { %v1230_v57 = vpack.c.bf16 %v726_v56, %v725_v55  ;;  %v711_v0 = vmax.f32 %v644_v60, 0.0 }
 0x108   : > { %1262 = vst [vmem:[%s1710_s19 + $0x58] sm:$0xff] %v1230_v57   ;;  %v594_v58 = vpop.f32.mrf.mxu2 }
 0x109   : > { %v683_v59 = vpop.f32.mrf.mxu3 }
 0x10a   : > { %v556_v61 = vpop.f32.mrf.mxu0  ;;  %v684_v2 = vadd.f32 %v683_v59, %v594_v58 }
 0x10b   : > { %v645_v62 = vpop.f32.mrf.mxu1 }
 0x10c   : > { %v646_v63 = vadd.f32 %v645_v62, %v556_v61  ;;  %v727_v9 = vmax.f32 %v684_v2, 0.0 }
 0x10e   : > { %v712_v1 = vmax.f32 %v646_v63, 0.0 }
 0x110   : > { %v1195_v3 = vpack.c.bf16 %v712_v1, %v711_v0  ;;  %v596_v4 = vpop.f32.mrf.mxu2 }
 0x111   : > { %v685_v5 = vpop.f32.mrf.mxu3 }
 0x112   : > { %1255 = vst [vmem:[%s1710_s19 + $0x20] sm:$0xff] %v1195_v3   ;;  %v686_v6 = vadd.f32 %v685_v5, %v596_v4  ;;  %v559_v7 = vpop.f32.mrf.mxu0 }
 0x113   : > { %v648_v8 = vpop.f32.mrf.mxu1 }
 0x114   : > { %v728_v10 = vmax.f32 %v686_v6, 0.0  ;;  %v649_v14 = vadd.f32 %v648_v8, %v559_v7 }
 0x116   : > { %v1235_v11 = vpack.c.bf16 %v728_v10, %v727_v9  ;;  %v713_v18 = vmax.f32 %v649_v14, 0.0 }
 0x118   : > { %1263 = vst [vmem:[%s1710_s19 + $0x60] sm:$0xff] %v1235_v11   ;;  %v599_v12 = vpop.f32.mrf.mxu2 }
 0x119   : > { %v688_v13 = vpop.f32.mrf.mxu3 }
 0x11a   : > { %v561_v15 = vpop.f32.mrf.mxu0  ;;  %v689_v20 = vadd.f32 %v688_v13, %v599_v12 }
 0x11b   : > { %v650_v16 = vpop.f32.mrf.mxu1 }
 0x11c   : > { %v651_v17 = vadd.f32 %v650_v16, %v561_v15  ;;  %v729_v27 = vmax.f32 %v689_v20, 0.0 }
 0x11e   : > { %v714_v19 = vmax.f32 %v651_v17, 0.0 }
 0x120   : > { %v1200_v21 = vpack.c.bf16 %v714_v19, %v713_v18  ;;  %v601_v22 = vpop.f32.mrf.mxu2 }
 0x121   : > { %v690_v23 = vpop.f32.mrf.mxu3 }
 0x122   : > { %1256 = vst [vmem:[%s1710_s19 + $0x28] sm:$0xff] %v1200_v21   ;;  %v691_v24 = vadd.f32 %v690_v23, %v601_v22  ;;  %v564_v25 = vpop.f32.mrf.mxu0 }
 0x123   : > { %v653_v26 = vpop.f32.mrf.mxu1 }
 0x124   : > { %v730_v28 = vmax.f32 %v691_v24, 0.0  ;;  %v654_v32 = vadd.f32 %v653_v26, %v564_v25 }
 0x126   : > { %v1240_v29 = vpack.c.bf16 %v730_v28, %v729_v27  ;;  %v715_v36 = vmax.f32 %v654_v32, 0.0 }
 0x128   : > { %1264 = vst [vmem:[%s1710_s19 + $0x68] sm:$0xff] %v1240_v29   ;;  %v604_v30 = vpop.f32.mrf.mxu2 }
 0x129   : > { %v693_v31 = vpop.f32.mrf.mxu3 }
 0x12a   : > { %v566_v33 = vpop.f32.mrf.mxu0  ;;  %v694_v38 = vadd.f32 %v693_v31, %v604_v30 }
 0x12b   : > { %v655_v34 = vpop.f32.mrf.mxu1 }
 0x12c   : > { %v656_v35 = vadd.f32 %v655_v34, %v566_v33  ;;  %v731_v45 = vmax.f32 %v694_v38, 0.0 }
 0x12e   : > { %v716_v37 = vmax.f32 %v656_v35, 0.0 }
 0x130   : > { %v1205_v39 = vpack.c.bf16 %v716_v37, %v715_v36  ;;  %v606_v40 = vpop.f32.mrf.mxu2 }
 0x131   : > { %v695_v41 = vpop.f32.mrf.mxu3 }
 0x132   : > { %1257 = vst [vmem:[%s1710_s19 + $0x30] sm:$0xff] %v1205_v39   ;;  %v696_v42 = vadd.f32 %v695_v41, %v606_v40  ;;  %v569_v43 = vpop.f32.mrf.mxu0 }
 0x133   : > { %v658_v44 = vpop.f32.mrf.mxu1 }
 0x134   : > { %v732_v46 = vmax.f32 %v696_v42, 0.0  ;;  %v659_v50 = vadd.f32 %v658_v44, %v569_v43 }
 0x136   : > { %v1245_v47 = vpack.c.bf16 %v732_v46, %v731_v45  ;;  %v717_v54 = vmax.f32 %v659_v50, 0.0 }
 0x138   : > { %1265 = vst [vmem:[%s1710_s19 + $0x70] sm:$0xff] %v1245_v47   ;;  %v609_v48 = vpop.f32.mrf.mxu2 }
 0x139   : > { %v698_v49 = vpop.f32.mrf.mxu3 }
 0x13a   : > { %v571_v51 = vpop.f32.mrf.mxu0  ;;  %v699_v56 = vadd.f32 %v698_v49, %v609_v48 }
 0x13b   : > { %v660_v52 = vpop.f32.mrf.mxu1 }
 0x13c   : > { %v661_v53 = vadd.f32 %v660_v52, %v571_v51  ;;  %v733_v61 = vmax.f32 %v699_v56, 0.0 }
 0x13e   : > { %v718_v55 = vmax.f32 %v661_v53, 0.0 }
 0x140   : > { %v1210_v57 = vpack.c.bf16 %v718_v55, %v717_v54  ;;  %v611_v58 = vpop.f32.mrf.mxu2 }
 0x141   : > { %v700_v59 = vpop.f32.mrf.mxu3 }
 0x142   : > { %1258 = vst [vmem:[%s1710_s19 + $0x38] sm:$0xff] %v1210_v57   ;;  %v701_v60 = vadd.f32 %v700_v59, %v611_v58 }
 0x144   : > { %v734_v62 = vmax.f32 %v701_v60, 0.0 }
 0x146   : > { %v1250_v63 = vpack.c.bf16 %v734_v62, %v733_v61 }
 0x148   : > { %1266 = vst [vmem:[%s1710_s19 + $0x78] sm:$0xff] %v1250_v63  }
 0x149   : > { %1449 = shalt.err (!%p1446_p0)
}
 0x14a   : > { %s1515_s30 = smov 64   ;;  %s1516_s7 = smov 4  }
 0x14b   : > { %1289 = dma.vmem_to_hbm [thread:$0]  (%p1611_p5), %s814_s21, 2048, %s816_s22, %s800_s12, %s1515_s30, %s1515_s30, %s1516_s7  }
 0x14c PF: > { %s830_s15 = sand.u32 1, %s1488_s9   ;;  %p1300_p3 = pnand %p915_p11, %p1581_p6 }
 0x14d   : > { %s831_s17 = scalar_lea.sflag [#allocation4], %s830_s15 }
 0x14e   : > { %p1301_p7 = pneg %p1300_p3 }
 0x150   : > { %1483 = dma.done.wait (%p1301_p7), %s831_s17, 2048  }
 0x151   : > { %1485 = vsyncadd (%p1301_p7), %s831_s17, 4294965248  ;;  %s19_s14 = sadd.s32 1, %s1508_s14   ;;  %s1777_s9 = smov %s1492_s10 }
 0x152   : > { %p16_p9 = scmp.ge.s32.totalorder %s19_s14, 4   ;;  %s1778_s10 = smov %s1496_s11 }
 0x153   : > { %s1779_s11 = smov %s1620_s8  ;;  %s1780_s12 = smov %s1504_s13 }
 0x154   : > { %s1781_s13 = smov %s1783_s29  ;;  %18 = sbr.rel (!%p16_p9) target bundleno = 7 (0x7), region = 78 }
 0x159   :  { %837 = vsyncpa [#allocation3], 1 }
 0x15a   :  { %839 = vsyncpa [#allocation3 + $0x1], 1 }
 0x15b   :  { %840 = vsyncpa [#allocation6], 1 }
 0x15c   :  { %841 = vsyncpa [#allocation4], 1 }
 0x15d   :  { %843 = vsyncpa [#allocation4 + $0x1], 1 }

</bundles_post_ra>
